<compile_context>
chip_gen: v6e
topology: v6e:2x2x1
jax: 0.10.0
libtpu: 0.0.40
codegen_flags: <defaults>
</compile_context>

<pallas_src>
import functools

import jax
import jax.numpy as jnp
from jax.experimental import pallas as pl
from jax.experimental.pallas import tpu as pltpu


def _round_up(x, m):
    return (x + m - 1) // m * m


def _loglik_kernel(img_ref, a_ref, meas_ref, partial_ref, sino_acc_ref, *, tk):
    """Grid = (m_tiles, k_tiles); k (pixel/reduction axis) is innermost."""
    k = pl.program_id(1)

    @pl.when(k == 0)
    def _():
        sino_acc_ref[...] = jnp.zeros_like(sino_acc_ref)

    # Partial forward projection: (B, tk) @ (tk, tm) -> (B, tm), f32 accumulate.
    start = pl.multiple_of(k * tk, tk)
    x = img_ref[:, pl.ds(start, tk)]
    sino_acc_ref[...] += jnp.dot(x, a_ref[...],
                                 preferred_element_type=jnp.float32)

    # Last reduction step for this m-tile: residual + lane-dense partial sum.
    @pl.when(k == pl.num_programs(1) - 1)
    def _():
        residual = sino_acc_ref[...] - meas_ref[...]
        rsq = residual * residual                       # (B, tm) f32
        _, tm = rsq.shape
        partial = rsq[:, 0:128]
        for c in range(1, tm // 128):                   # static unroll, per-lane adds
            partial = partial + rsq[:, c * 128:(c + 1) * 128]
        partial_ref[...] = partial[None, :, :]          # (1, B, 128)


def linear_log_likelihood_loss(image_flat, A, meas_flat, noise_variance,
                               *, tm, tk):
    """image_flat: (B, P), A: (P, M), meas_flat: (B, M) f32 -> scalar loss.

    Requires P % tk == 0, M % tm == 0, tm % 128 == 0 (the class wrapper pads).
    """
    B, P = image_flat.shape
    P2, M = A.shape
    assert P == P2 and P % tk == 0 and M % tm == 0 and tm % 128 == 0
    num_m, num_k = M // tm, P // tk

    a_bytes = jnp.dtype(A.dtype).itemsize
    img_bytes = jnp.dtype(image_flat.dtype).itemsize
    vmem_est = (2 * tk * tm * a_bytes            # double-buffered A tile (hot)
                + 2 * B * P * img_bytes          # resident image
                + 2 * B * tm * 4                 # measurements tile
                + B * tm * 4                     # sinogram accumulator scratch
                + 2 * B * 128 * 4)               # partial-loss output block
    vmem_limit = int(max(32 << 20, min(vmem_est + (8 << 20), 64 << 20)))

    partials = pl.pallas_call(
        functools.partial(_loglik_kernel, tk=tk),
        out_shape=jax.ShapeDtypeStruct((num_m, B, 128), jnp.float32),
        grid_spec=pltpu.PrefetchScalarGridSpec(
            num_scalar_prefetch=0,
            grid=(num_m, num_k),
            in_specs=[
                # Full flattened image, resident across the whole grid.
                pl.BlockSpec((B, P), lambda m, k: (0, 0)),
                # System-matrix tile: streamed exactly once (the hot DMA).
                pl.BlockSpec((tk, tm), lambda m, k: (k, m)),
                # Measurement tile for the current m block.
                pl.BlockSpec((B, tm), lambda m, k: (0, m)),
            ],
            out_specs=pl.BlockSpec((1, B, 128), lambda m, k: (m, 0, 0)),
            scratch_shapes=[pltpu.VMEM((B, tm), jnp.float32)],
        ),
        compiler_params=pltpu.CompilerParams(
            # m-tiles are independent (splittable across TensorCores on v7x);
            # k is the reduction axis.
            dimension_semantics=("parallel", "arbitrary"),
            vmem_limit_bytes=vmem_limit,
        ),
    )(image_flat, A, meas_flat)

    return (0.5 / float(noise_variance)) * jnp.sum(partials)


class LinearLogLikelihood:
    """JAX/Pallas port of the PyTorch LinearLogLikelihood loss term (forward).

    The CTProjector is replaced by an explicit dense system matrix (P, M).
    """
    # TODO(synk): gradient / hessian / inverse_hessian need the adjoint
    # (back-projection) operator of the CTProjector; only forward() is ported.

    def __init__(self, measurements, system_matrix, noise_variance=1.0,
                 compute_dtype=jnp.bfloat16, tm=2048, tk=1024):
        B = measurements.shape[0]
        meas_flat = jnp.asarray(measurements, jnp.float32).reshape(B, -1)
        A = jnp.asarray(system_matrix)
        P, M = A.shape
        assert meas_flat.shape[1] == M

        # Clamp tiles to the (rounded) problem size, then zero-pad so tiles
        # divide exactly.  Zero padding contributes exactly 0 to the loss.
        tm = min(tm, _round_up(M, 128))
        tk = min(tk, _round_up(P, 8))
        M_pad = _round_up(M, tm)
        P_pad = _round_up(P, tk)

        self.P, self.M = P, M
        self.P_pad = P_pad
        self.tm, self.tk = tm, tk
        self.compute_dtype = compute_dtype
        self.noise_variance = float(noise_variance)
        # A is streamed in a narrow dtype (bf16 by default); accumulation
        # on the MXU stays f32.
        self.A = jnp.pad(A.astype(compute_dtype),
                         ((0, P_pad - P), (0, M_pad - M)))
        self.meas_flat = jnp.pad(meas_flat, ((0, 0), (0, M_pad - M)))

    def forward(self, image, sinogram=None):
        # image: (B, 1, H, W) NCHW.
        if sinogram is not None:
            # Precomputed-sinogram shortcut (no projection): pure JAX path.
            residual = (sinogram.reshape(sinogram.shape[0], -1)
                        - self.meas_flat[:, :self.M])
            return 0.5 * jnp.sum(residual ** 2) / self.noise_variance
        B = image.shape[0]
        x = jnp.asarray(image, self.compute_dtype).reshape(B, -1)
        x = jnp.pad(x, ((0, 0), (0, self.P_pad - self.P)))
        return linear_log_likelihood_loss(
            x, self.A, self.meas_flat, self.noise_variance,
            tm=self.tm, tk=self.tk)


if __name__ == "__main__":
    # Small shapes consistent with the module's NCHW conventions:
    #   image:             (B, 1, H, W) = (2, 1, 16, 16)  -> P = 256 pixels
    #   sinogram/measure.: (B, 1, V, D) = (2, 1, 8, 16)   -> M = 128 bins
    B, H, W = 2, 16, 16
    V, D = 8, 16
    P, M = H * W, V * D
    noise_variance = 2.0

    key = jax.random.PRNGKey(0)
    k_img, k_meas, k_A = jax.random.split(key, 3)
    image = jax.random.normal(k_img, (B, 1, H, W), dtype=jnp.float32)
    measurements = jax.random.normal(k_meas, (B, 1, V, D), dtype=jnp.float32)
    # Deterministic synthetic linear projector (system matrix), pixels -> bins.
    A = jax.random.normal(k_A, (P, M), dtype=jnp.float32) / jnp.sqrt(P)

    loss_term = LinearLogLikelihood(measurements, A, noise_variance)
    loss = jax.block_until_ready(loss_term.forward(image))

    # Pure-JAX reference of the PyTorch forward semantics, using the same bf16
    # quantization of A / image that the kernel streams (f32 accumulation).
    img_q = image.reshape(B, -1).astype(jnp.bfloat16)
    A_q = A.astype(jnp.bfloat16)
    sino_ref = jnp.dot(img_q, A_q, preferred_element_type=jnp.float32)
    residual = sino_ref - measurements.reshape(B, -1)
    loss_ref = 0.5 * jnp.sum(residual ** 2) / noise_variance

    assert jnp.allclose(loss, loss_ref, rtol=1e-4, atol=1e-4), (loss, loss_ref)
    print("KERNEL_OK")
</pallas_src>

<mosaic_0001>
module attributes {stable_mosaic.version = 11 : i64} {
  func.func @_loglik_kernel(%arg0: i32, %arg1: i32, %arg2: memref<2x256xbf16, #tpu.memory_space<vmem>>, %arg3: memref<256x128xbf16, #tpu.memory_space<vmem>>, %arg4: memref<2x128xf32, #tpu.memory_space<vmem>>, %arg5: memref<1x2x128xf32, #tpu.memory_space<vmem>>, %arg6: memref<2x128xf32, #tpu.memory_space<vmem>>) attributes {dimension_semantics = [#tpu.dimension_semantics<parallel>, #tpu.dimension_semantics<arbitrary>], iteration_bounds = array<i64: 1, 1>, scalar_prefetch = 0 : i64, scratch_operands = 1 : i64, tpu.core_type = #tpu.core_type<tc>, window_params = [{pipeline_mode = #tpu.pipeline_mode<synchronous>, transform_indices = @transform_0, window_bounds = array<i64: 2, 256>}, {transform_indices = @transform_1, window_bounds = array<i64: 256, 128>}, {transform_indices = @transform_2, window_bounds = array<i64: 2, 128>}, {transform_indices = @transform_3, window_bounds = array<i64: 1, 2, 128>}]} {
    %c0_i32 = arith.constant 0 : i32
    %0 = arith.cmpi eq, %arg1, %c0_i32 : i32
    %1 = arith.extui %0 : i1 to i32
    %c0_i32_0 = arith.constant 0 : i32
    %2 = arith.cmpi ne, %1, %c0_i32_0 : i32
    scf.if %2 {
      %cst_9 = arith.constant 0.000000e+00 : f32
      %15 = vector.broadcast %cst_9 : f32 to vector<2x128xf32>
      %c0_10 = arith.constant 0 : index
      %c0_11 = arith.constant 0 : index
      %16 = vector.load %arg6[%c0_10, %c0_11] : memref<2x128xf32, #tpu.memory_space<vmem>>, vector<2x128xf32>
      tpu.vector_store %arg6[%c0_10, %c0_11], %15 {strides = array<i32>} : memref<2x128xf32, #tpu.memory_space<vmem>>, vector<2x128xf32>,
    } else {
    }
    %c256_i32 = arith.constant 256 : i32
    %3 = arith.muli %arg1, %c256_i32 : i32
    %4 = tpu.assume_multiple %3, 256 : i32
    %c0 = arith.constant 0 : index
    %5 = arith.index_cast %4 : i32 to index
    %6 = vector.load %arg2[%c0, %5] : memref<2x256xbf16, #tpu.memory_space<vmem>>, vector<2x256xbf16>
    %c0_1 = arith.constant 0 : index
    %c0_2 = arith.constant 0 : index
    %7 = vector.load %arg6[%c0_1, %c0_2] : memref<2x128xf32, #tpu.memory_space<vmem>>, vector<2x128xf32>
    %c0_3 = arith.constant 0 : index
    %c0_4 = arith.constant 0 : index
    %8 = vector.load %arg3[%c0_3, %c0_4] : memref<256x128xbf16, #tpu.memory_space<vmem>>, vector<256x128xbf16>
    %cst = arith.constant dense<0.000000e+00> : vector<2x128xf32>
    %9 = tpu.matmul %6, %8, %cst {dimension_numbers = #tpu.dot_dimension_numbers<[1], [0], [0], [1], [0, 0, 1, 1], [], []>} : vector<2x256xbf16>, vector<256x128xbf16>, vector<2x128xf32> -> vector<2x128xf32>
    %10 = arith.addf %7, %9 : vector<2x128xf32>
    %c0_5 = arith.constant 0 : index
    %c0_6 = arith.constant 0 : index
    %11 = vector.load %arg6[%c0_5, %c0_6] : memref<2x128xf32, #tpu.memory_space<vmem>>, vector<2x128xf32>
    tpu.vector_store %arg6[%c0_5, %c0_6], %10 {strides = array<i32>} : memref<2x128xf32, #tpu.memory_space<vmem>>, vector<2x128xf32>,
    %c0_i32_7 = arith.constant 0 : i32
    %12 = arith.cmpi eq, %arg1, %c0_i32_7 : i32
    %13 = arith.extui %12 : i1 to i32
    %c0_i32_8 = arith.constant 0 : i32
    %14 = arith.cmpi ne, %13, %c0_i32_8 : i32
    scf.if %14 {
      %c0_9 = arith.constant 0 : index
      %c0_10 = arith.constant 0 : index
      %15 = vector.load %arg6[%c0_9, %c0_10] : memref<2x128xf32, #tpu.memory_space<vmem>>, vector<2x128xf32>
      %c0_11 = arith.constant 0 : index
      %c0_12 = arith.constant 0 : index
      %16 = vector.load %arg4[%c0_11, %c0_12] : memref<2x128xf32, #tpu.memory_space<vmem>>, vector<2x128xf32>
      %17 = arith.subf %15, %16 : vector<2x128xf32>
      %18 = arith.mulf %17, %17 : vector<2x128xf32>
      %19 = vector.shape_cast %18 : vector<2x128xf32> to vector<1x2x128xf32>
      %c0_13 = arith.constant 0 : index
      %c0_14 = arith.constant 0 : index
      %c0_15 = arith.constant 0 : index
      %20 = vector.load %arg5[%c0_13, %c0_14, %c0_15] : memref<1x2x128xf32, #tpu.memory_space<vmem>>, vector<1x2x128xf32>
      tpu.vector_store %arg5[%c0_13, %c0_14, %c0_15], %19 {strides = array<i32>} : memref<1x2x128xf32, #tpu.memory_space<vmem>>, vector<1x2x128xf32>,
    } else {
    }
    return
  }
  func.func @transform_0(%arg0: i32, %arg1: i32) -> (i32, i32) {
    %c0_i32 = arith.constant 0 : i32
    %c0_i32_0 = arith.constant 0 : i32
    %c0_i32_1 = arith.constant 0 : i32
    return %c0_i32, %c0_i32_0 : i32, i32
  }
  func.func @transform_1(%arg0: i32, %arg1: i32) -> (i32, i32) {
    %c0_i32 = arith.constant 0 : i32
    return %arg1, %arg0 : i32, i32
  }
  func.func @transform_2(%arg0: i32, %arg1: i32) -> (i32, i32) {
    %c0_i32 = arith.constant 0 : i32
    %c0_i32_0 = arith.constant 0 : i32
    return %c0_i32, %arg0 : i32, i32
  }
  func.func @transform_3(%arg0: i32, %arg1: i32) -> (i32, i32, i32) {
    %c0_i32 = arith.constant 0 : i32
    %c0_i32_0 = arith.constant 0 : i32
    %c0_i32_1 = arith.constant 0 : i32
    return %arg0, %c0_i32, %c0_i32_0 : i32, i32, i32
  }
}

</mosaic_0001>

<bundles_post_ra>
// kernel: tpu_custom_call.1
= control target key start
LH: loop header
LB: loop body
LE: loop exit
PB: predicated region body
PF: predicated region fallthrough
CT: control target
= control target key end

     0   :  { %8 = vsyncpa [#allocation4], 0  ;;  %s440_s0 = inlined_call_operand.hbm [shape: bf16[2,256], index: 0, kind: input, shape index: {}]   ;;  %s441_s1 = inlined_call_operand.hbm [shape: bf16[256,128], index: 1, kind: input, shape index: {}]   ;;  %s442_s2 = inlined_call_operand.vmem [shape: f32[2,128], index: 2, kind: input, shape index: {}]   ;;  %s443_s3 = inlined_call_operand.hbm [shape: f32[1,2,128], index: 3, kind: output, shape index: {}]  }
   0x1   :  { %9 = vsyncpa [#allocation7], 0 }
   0x2   :  { %10 = vsyncpa [#allocation5], 0  ;;  %s401_s12 = smov [#allocation3]   ;;  %s402_s14 = smov [#allocation6]  }
   0x3   :  { %s17_s13 = sshll.u32 %s401_s12, 4  ;;  %s26_s15 = sshll.u32 %s402_s14, 4  ;;  %s18_s13 = int_to_ptr.vmem [resolvable:$true] %s17_s13  ;;  %s27_s15 = int_to_ptr.vmem [resolvable:$true] %s26_s15 }
   0x4   :  { %s343_s16 = scalar_lea.vmem %s18_s13, 32  ;;  %p348_p1 = scmp.lt.s32.totalorder %s18_s13, %s18_s13 }
   0x5   :  { %p344_p0 = scmp.ne.s32.totalorder %s18_s13, %s343_s16  ;;  %p349_p2 = scmp.lt.s32.totalorder %s343_s16, %s343_s16 }
   0x7   :  { %p350_p3 = por %p349_p2, %p348_p1 }
   0x9   :  { %p351_p4 = pnand %p350_p3, %p344_p0 }
   0xb   :  { %354 = shalt.err (!%p351_p4)
}
   0xc   :  { %20 = dma.hbm_to_vmem [thread:$0]  %s440_s0, 32, %s18_s13, [#allocation4]  }
   0xd   :  { %s363_s19 = scalar_lea.vmem %s27_s15, 2048  ;;  %p368_p6 = scmp.lt.s32.totalorder %s27_s15, %s27_s15 }
   0xe   :  { %p364_p5 = scmp.ne.s32.totalorder %s27_s15, %s363_s19  ;;  %p369_p7 = scmp.lt.s32.totalorder %s363_s19, %s363_s19 }
  0x10   :  { %p370_p8 = por %p369_p7, %p368_p6 }
  0x12   :  { %p371_p9 = pnand %p370_p8, %p364_p5 }
  0x14   :  { %374 = shalt.err (!%p371_p9)
}
  0x15   :  { %s403_s20 = smov 64   ;;  %s404_s21 = smov 4  }
  0x16   :  { %32 = dma.hbm_to_vmem [thread:$0]  %s441_s1, 2048, %s27_s15, [#allocation7], %s403_s20, %s403_s20, %s404_s21  }
  0x17   :  { %395 = dma.done.wait [#allocation4], 32  }
  0x18   :  { %396 = vsyncadd [#allocation4], 4294967264 }
  0x19   :  { %397 = dma.done.wait [#allocation7], 2048  }
  0x1a   :  { %398 = vsyncadd [#allocation7], 4294965248  ;;  %v319_v0 = vld [vmem:[#allocation6 + $0x78] sm:$0xff]   ;;  %v321_v2 = vld [vmem:[#allocation6 + $0x70] sm:$0xff]   ;;  %v405_v6 = vmov 1966171168   ;;  %v97_v8 = vlaneseq }
  0x1b   :  { %v320_v1 = vld [vmem:[#allocation6 + $0x38] sm:$0xff]   ;;  %290 = vmatprep.subr.bf16.mxu0 %v319_v0  ;;  %v322_v3 = vld [vmem:[#allocation6 + $0x30] sm:$0xff]   ;;  %v323_v4 = vld [vmem:[#allocation6 + $0x68] sm:$0xff]   ;;  %v95_v7 = vunpack.c.l.s4 %v405_v6  ;;  %v406_v26 = vmov 0.0   ;;  %s407_s24 = smov [#allocation8]  }
  0x1c   :  { %291 = vmatpush3.bf16.msra.mxu0 %v320_v1  ;;  %v324_v5 = vld [vmem:[#allocation6 + $0x28] sm:$0xff]   ;;  %v325_v9 = vld [vmem:[#allocation6 + $0x60] sm:$0xff]   ;;  %v98_v12 = vshrl.u32 %v97_v8, 7  ;;  %v327_v13 = vld [vmem:[#allocation6 + $0x58] sm:$0xff]   ;;  %46 = vst [vmem:[#allocation2] sm:$0x3] %v406_v26 }
  0x1d   :  { %292 = vmatprep.subr.bf16.mxu0 %v321_v2  ;;  %v326_v10 = vld [vmem:[#allocation6 + $0x20] sm:$0xff]   ;;  %v96_v11 = vunpack.c.0.s8 %v95_v7  ;;  %v328_v14 = vld [vmem:[#allocation6 + $0x18] sm:$0xff]   ;;  %v329_v16 = vld [vmem:[#allocation6 + $0x50] sm:$0xff]   ;;  %s262_s25 = sshll.u32 %s407_s24, 4  ;;  %s263_s25 = int_to_ptr.vmem [resolvable:$true] %s262_s25 }
  0x1e   :  { %v273_v17 = vld.sshfl [vmem:[#allocation3] sm:$0x11 pattern:$0x75316420]  ;;  %v330_v19 = vld [vmem:[#allocation6 + $0x10] sm:$0xff]   ;;  %v331_v21 = vld [vmem:[#allocation6 + $0x48] sm:$0xff]   ;;  %p380_p11 = scmp.lt.s32.totalorder %s263_s25, %s263_s25 }
  0x1f   :  { %v99_v15 = vsub.s32 %v96_v11, %v98_v12  ;;  %v93_v18 = vcombine.high %v273_v17, %v273_v17  ;;  %v332_v22 = vld [vmem:[#allocation6 + $0x8] sm:$0xff]   ;;  %v333_v23 = vld [vmem:[#allocation6 + $0x40] sm:$0xff]   ;;  %v252_v34 = vld [vmem:[%s442_s2] sm:$0x3]  ;;  %s375_s26 = scalar_lea.vmem %s263_s25, 32 }
  0x20   :  { %293 = vmatpush3.bf16.msra.mxu0 %v322_v3  ;;  %v334_v24 = vld [vmem:[#allocation6] sm:$0xff]   ;;  %p376_p10 = scmp.ne.s32.totalorder %s263_s25, %s375_s26  ;;  %p381_p12 = scmp.lt.s32.totalorder %s375_s26, %s375_s26 }
  0x21   :  { %294 = vmatprep.subr.bf16.mxu0 %v323_v4  ;;  %v107_v20 = vrot.slane %v93_v18, %v99_v15  ;;  %v100_v25 = vrot.slane %v273_v17, %v99_v15 }
  0x22   :  { %p382_p13 = por %p381_p12, %p380_p11 }
  0x23   :  { %238 = vmatprep.mubr.bf16.mxu0 %v107_v20  ;;  %v52_v28 = vld [vmem:[#allocation2] sm:$0x3] }
  0x24   :  { %295 = vmatpush3.bf16.msra.mxu0 %v324_v5  ;;  %p383_p0 = pnand %p382_p13, %p376_p10 }
  0x25   :  { %296 = vmatprep.subr.bf16.mxu0 %v325_v9 }
  0x28   :  { %297 = vmatpush3.bf16.msra.mxu0 %v326_v10 }
  0x29   :  { %298 = vmatprep.subr.bf16.mxu0 %v327_v13 }
  0x2c   :  { %299 = vmatpush3.bf16.msra.mxu0 %v328_v14 }
  0x2d   :  { %300 = vmatprep.subr.bf16.mxu0 %v329_v16 }
  0x30   :  { %301 = vmatpush3.bf16.msra.mxu0 %v330_v19 }
  0x31   :  { %302 = vmatprep.subr.bf16.mxu0 %v331_v21 }
  0x34   :  { %303 = vmatpush3.bf16.msra.mxu0 %v332_v22 }
  0x35   :  { %304 = vmatprep.subr.bf16.mxu0 %v333_v23 }
  0x38   :  { %305 = vmatpush3.bf16.msra.mxu0 %v334_v24 }
  0x3b   :  { %239 = vmatmul.mubr.bf16.vlgmr.msra.gmra.mxu0 %v100_v25 }
  0xfb   :  { %v306_v27 = vpop.f32.mrf.mxu0 }
  0xfd   :  { %v307_v29 = vpop.f32.mrf.mxu0 }
  0xfe   :  { %v308_v30 = vadd.f32 %v307_v29, %v306_v27 }
  0xff   :  { %v309_v31 = vpop.f32.mrf.mxu0 }
 0x100   :  { %v246_v32 = vadd.f32 %v308_v30, %v52_v28 }
 0x101   :  { %v310_v33 = vpop.f32.mrf.mxu0 }
 0x102   :  { %247 = vst [vmem:[#allocation2] sm:$0x3] %v246_v32 }
 0x109   :  { %v251_v35 = vld [vmem:[#allocation2] sm:$0x3] }
 0x10a   :  { %v253_v36 = vsub.f32 %v251_v35, %v252_v34 }
 0x10c   :  { %v254_v37 = vmul.f32 %v253_v36, %v253_v36 }
 0x10e   :  { %255 = vst [vmem:[#allocation8] sm:$0x3] %v254_v37 }
 0x10f   :  { %386 = shalt.err (!%p383_p0)
}
 0x110   :  { %265 = dma.vmem_to_hbm [thread:$0]  %s263_s25, 32, %s443_s3, [#allocation5]  }
 0x111   :  { %399 = dma.done.wait [#allocation5], 32  }
 0x112   :  { %400 = vsyncadd [#allocation5], 4294967264 }
 0x113   :  { %269 = vsyncpa [#allocation4], 1 }
 0x114   :  { %270 = vsyncpa [#allocation7], 1 }
 0x115   :  { %271 = vsyncpa [#allocation5], 1 }

</bundles_post_ra>
